<compile_context>
chip_gen: v7x
topology: tpu7x:2x2x1
jax: 0.10.0
libtpu: 0.0.40
codegen_flags: <defaults>
</compile_context>

<pallas_src>
import functools

import jax
import jax.numpy as jnp
from jax.experimental import pallas as pl
from jax.experimental.pallas import tpu as pltpu


def _ukd_kernel(x_ref, t_ref, *rest, c_old, alpha, hw, tile, n_inner,
                has_mask, tail_possible):
    """Per-tile unbiased KD loss; accumulates per-lane partial sums into acc_ref."""
    if has_mask:
        m_ref, acc_ref = rest
    else:
        (acc_ref,) = rest

    @pl.when(pl.program_id(2) == 0)
    def _():
        acc_ref[...] = jnp.zeros_like(acc_ref)

    x = x_ref[...].astype(jnp.float32)             # (c_new, T) new-model logits
    t = t_ref[...].astype(jnp.float32)             # (c_old, T) old-model logits
    if alpha != 1.0:
        t = t * alpha

    # New-model log-softmax pieces.  Only offset-0 sublane slices are used:
    # s_bkg = e[0] + sum(e[c_old:]) is rewritten as (s_all - s_head) + e[0]
    # (head = first c_old channels), avoiding the offset-c_old slice.
    mx = jnp.max(x, axis=0, keepdims=True)                                   # (1, T)
    e = jnp.exp(x - mx)                                                      # (c_new, T)
    s_all = jnp.sum(e, axis=0, keepdims=True)                                # (1, T)
    s_head = jnp.sum(e[:c_old, :], axis=0, keepdims=True)                    # (1, T)
    # maximum(...) guards the tiny cancellation case so log() never sees <= 0.
    s_bkg = jnp.maximum(s_all - s_head, 0.0) + e[0:1, :]                     # (1, T)
    log_s_all = jnp.log(s_all)
    log_den = mx + log_s_all                                                 # (1, T)
    out_bkg = jnp.log(s_bkg) - log_s_all                                     # (1, T)

    # softmax(alpha * targets): keep un-normalized exponentials and divide once
    # at the end via the EUP approximate reciprocal (near-free slot).
    mt = jnp.max(t, axis=0, keepdims=True)
    et = jnp.exp(t - mt)                                                     # (c_old, T)
    inv = pl.reciprocal(jnp.sum(et, axis=0, keepdims=True), approx=True)     # (1, T)

    # sum_{c>=1} et[c]*(x[c]-log_den) + et[0]*out_bkg, written with offset-0
    # slices only: weighted sum over ALL c_old channels, then swap the channel-0
    # term from (x[0]-log_den) to out_bkg.
    w_all = jnp.sum(et * (x[:c_old, :] - log_den), axis=0, keepdims=True)    # (1, T)
    loss = (w_all + et[0:1, :] * (out_bkg - (x[0:1, :] - log_den))) * inv    # (1, T)

    if has_mask:
        loss = loss * m_ref[...].astype(jnp.float32)   # in-kernel cast (free VPU op)

    if tail_possible:
        # Global pixel offset of this tile (outer split + inner index).
        gstart = (pl.program_id(1) * n_inner + pl.program_id(2)) * tile

        @pl.when(gstart + tile <= hw)
        def _():
            acc_ref[...] += loss

        @pl.when(gstart + tile > hw)
        def _():
            # Overhanging lanes hold unspecified data; channel reductions are
            # per-lane so garbage can't leak across lanes, and the select (after
            # the mask multiply) drops any NaN/Inf in the invalid lanes.
            lane = jax.lax.broadcasted_iota(jnp.int32, (1, tile), 1)
            acc_ref[...] += jnp.where(gstart + lane < hw, loss, 0.0)
    else:
        acc_ref[...] += loss


def _vmem_capacity_bytes():
    """Per-core VMEM capacity, with a conservative (v7x-safe) fallback."""
    try:
        cap = getattr(pltpu.get_tpu_info(), "vmem_capacity_bytes", None)
        if cap:
            return int(cap)
    except Exception:
        pass
    return 64 << 20


def unbiased_kd_loss(inputs, targets, mask=None, *, reduction="mean",
                     alpha=1.0, max_tile=8192):
    """inputs: (B, C_new, H, W); targets: (B, C_old, H, W) — NCHW like PyTorch.

    inputs/targets may be float32 or bfloat16 (the kernel computes in float32;
    bf16 end-to-end halves HBM bytes and is recommended on v5e/v6e).  mask may be
    bool / int / float of shape (B, H, W); it is consumed in its native width.
    """
    B, c_new, H, W = inputs.shape
    c_old = targets.shape[1]
    assert c_new > c_old, "inputs must have more channels than targets (new classes)"
    hw = H * W
    n = B * hw

    # Free trailing-dim merges — no HBM transpose/pad passes over the logits.
    x = inputs.reshape(B, c_new, hw)
    t = targets.reshape(B, c_old, hw)

    has_mask = mask is not None
    if has_mask:
        m = mask.reshape(B, 1, hw)
        if m.dtype == jnp.bool_:
            m = m.astype(jnp.bfloat16)      # narrow, DMA-friendly; cast to f32 in-kernel
        mask_bytes = m.dtype.itemsize
    else:
        m = None
        mask_bytes = 0

    # ---- Generation-aware tile / VMEM sizing (DMA buffers + f32 temporaries). ----
    x_b = x.dtype.itemsize
    t_b = t.dtype.itemsize
    dma_per_lane = 2 * (c_new * x_b + c_old * t_b + mask_bytes)   # double-buffered inputs
    tmp_per_lane = 4 * (2 * c_new + 4 * c_old + 16)               # live f32 temps (x,e,t,et,...)
    out_per_lane = 2 * 4                                          # (1, T) accumulator
    bytes_per_lane = dma_per_lane + tmp_per_lane + out_per_lane

    vmem_cap = _vmem_capacity_bytes()
    # ~48 MiB on v7x (64 MiB/TC), ~96 MiB on v5e/v6e (128 MiB) — always leave headroom.
    vmem_budget = min(vmem_cap * 3 // 4, 100 << 20)

    if hw < 128:
        tile = hw                                   # full-extent lane block (allowed)
    else:
        lane_cap = min(max_tile, (hw // 128) * 128)
        fit = (vmem_budget // bytes_per_lane) // 128 * 128
        tile = int(max(128, min(lane_cap, fit)))

    num_tiles = pl.cdiv(hw, tile)
    # Split the pixel axis so both v7x TensorCores get work even when B == 1.
    n_outer = 2 if num_tiles >= 2 else 1
    n_inner = pl.cdiv(num_tiles, n_outer)
    tail_possible = (n_outer * n_inner * tile) > hw

    # Clamp overhanging block indices back onto the last real tile (their
    # contribution is zeroed in-kernel by the lane-validity select).
    if n_outer * n_inner > num_tiles:
        last_tile = num_tiles - 1

        def pix_idx(o, i):
            return jnp.minimum(o * n_inner + i, last_tile)
    else:
        def pix_idx(o, i):
            return o * n_inner + i

    in_arrays = [x, t]
    in_specs = [
        pl.BlockSpec((None, c_new, tile), lambda b, o, i: (b, 0, pix_idx(o, i))),
        pl.BlockSpec((None, c_old, tile), lambda b, o, i: (b, 0, pix_idx(o, i))),
    ]
    if has_mask:
        in_arrays.append(m)
        in_specs.append(
            pl.BlockSpec((None, 1, tile), lambda b, o, i: (b, 0, pix_idx(o, i))))

    kernel = functools.partial(
        _ukd_kernel, c_old=c_old, alpha=float(alpha), hw=hw, tile=tile,
        n_inner=n_inner, has_mask=has_mask, tail_possible=tail_possible)

    est_usage = bytes_per_lane * tile + (2 << 20)
    vmem_limit = int(min(vmem_budget, max(est_usage * 5 // 4, 16 << 20)))

    partials = pl.pallas_call(
        kernel,
        out_shape=jax.ShapeDtypeStruct((B, n_outer, 1, tile), jnp.float32),
        grid_spec=pltpu.PrefetchScalarGridSpec(
            num_scalar_prefetch=0,
            grid=(B, n_outer, n_inner),
            in_specs=in_specs,
            # Per-(batch, outer) resident accumulator across the inner pixel axis.
            out_specs=pl.BlockSpec((None, None, 1, tile),
                                   lambda b, o, i: (b, o, 0, 0)),
        ),
        compiler_params=pltpu.CompilerParams(
            dimension_semantics=("parallel", "parallel", "arbitrary"),
            vmem_limit_bytes=vmem_limit),
    )(*in_arrays)

    total = jnp.sum(partials)           # /c_old and /N hoisted out of the kernel
    if reduction == "mean":
        return -total / (c_old * n)     # torch.mean over all B*H*W pixels
    elif reduction == "sum":
        return -total / c_old
    else:
        raise NotImplementedError("reduction='none' not implemented")


def _reference(inputs, targets, mask=None, alpha=1.0, reduction="mean"):
    """Pure-JAX port of the PyTorch forward for verification."""
    c_old = targets.shape[1]
    targets = targets * alpha
    den = jax.nn.logsumexp(inputs, axis=1)                                    # (B,H,W)
    outputs_no_bgk = inputs[:, 1:c_old] - den[:, None]                        # (B,c_old-1,H,W)
    bkg = jnp.concatenate([inputs[:, 0:1], inputs[:, c_old:]], axis=1)
    outputs_bkg = jax.nn.logsumexp(bkg, axis=1) - den                         # (B,H,W)
    labels = jax.nn.softmax(targets, axis=1)
    loss = (labels[:, 0] * outputs_bkg
            + jnp.sum(labels[:, 1:] * outputs_no_bgk, axis=1)) / c_old
    if mask is not None:
        loss = loss * mask.astype(jnp.float32)
    if reduction == "mean":
        return -jnp.mean(loss)
    elif reduction == "sum":
        return -jnp.sum(loss)
    return -loss


if __name__ == "__main__":
    key = jax.random.PRNGKey(0)
    k1, k2, k3, k4, k5 = jax.random.split(key, 5)

    # Case 1: no mask, mean reduction (PyTorch defaults).
    B, C_new, C_old, Hs, Ws = 2, 6, 4, 16, 16     # new_cl = 2
    inputs = jax.random.normal(k1, (B, C_new, Hs, Ws), jnp.float32)
    targets = jax.random.normal(k2, (B, C_old, Hs, Ws), jnp.float32)
    out = jax.block_until_ready(unbiased_kd_loss(inputs, targets, reduction="mean"))
    ref = _reference(inputs, targets, reduction="mean")
    assert jnp.allclose(out, ref, rtol=1e-3, atol=1e-3), (out, ref)

    # Case 2: ragged pixel tail (H*W=180 not a multiple of 128) + user mask +
    # sum reduction + alpha != 1.  Exercises the outer pixel split and tail gate.
    B2, Cn2, Co2, H2, W2 = 2, 7, 5, 12, 15
    inputs2 = jax.random.normal(k3, (B2, Cn2, H2, W2), jnp.float32)
    targets2 = jax.random.normal(k4, (B2, Co2, H2, W2), jnp.float32)
    mask2 = (jax.random.uniform(k5, (B2, H2, W2)) > 0.3).astype(jnp.float32)
    out2 = jax.block_until_ready(
        unbiased_kd_loss(inputs2, targets2, mask2, reduction="sum", alpha=0.5))
    ref2 = _reference(inputs2, targets2, mask2, alpha=0.5, reduction="sum")
    assert jnp.allclose(out2, ref2, rtol=1e-3, atol=1e-3), (out2, ref2)

    print("KERNEL_OK")
</pallas_src>

<mosaic_0001>
module attributes {stable_mosaic.version = 11 : i64} {
  func.func @_ukd_kernel(%arg0: i32, %arg1: i32, %arg2: i32, %arg3: memref<1x6x256xf32, #tpu.memory_space<vmem>>, %arg4: memref<1x4x256xf32, #tpu.memory_space<vmem>>, %arg5: memref<1x1x1x256xf32, #tpu.memory_space<vmem>>) attributes {dimension_semantics = [#tpu.dimension_semantics<parallel>, #tpu.dimension_semantics<parallel>, #tpu.dimension_semantics<arbitrary>], iteration_bounds = array<i64: 2, 1, 1>, scalar_prefetch = 0 : i64, scratch_operands = 0 : i64, tpu.core_type = #tpu.core_type<tc>, window_params = [{transform_indices = @transform_0, window_bounds = array<i64: 1, 6, 256>}, {transform_indices = @transform_1, window_bounds = array<i64: 1, 4, 256>}, {transform_indices = @transform_2, window_bounds = array<i64: 1, 1, 1, 256>}]} {
    %c0_i32 = arith.constant 0 : i32
    %0 = arith.cmpi eq, %arg2, %c0_i32 : i32
    %1 = arith.extui %0 : i1 to i32
    %c0_i32_0 = arith.constant 0 : i32
    %2 = arith.cmpi ne, %1, %c0_i32_0 : i32
    scf.if %2 {
      %cst_20 = arith.constant 0.000000e+00 : f32
      %53 = vector.broadcast %cst_20 : f32 to vector<1x256xf32>
      %c0_21 = arith.constant 0 : index
      %c0_22 = arith.constant 0 : index
      %c0_23 = arith.constant 0 : index
      %c0_24 = arith.constant 0 : index
      %54 = vector.load %arg5[%c0_21, %c0_22, %c0_23, %c0_24] : memref<1x1x1x256xf32, #tpu.memory_space<vmem>>, vector<1x1x1x256xf32>
      %55 = vector.shape_cast %54 : vector<1x1x1x256xf32> to vector<1x256xf32>
      %56 = vector.shape_cast %53 : vector<1x256xf32> to vector<1x1x1x256xf32>
      tpu.vector_store %arg5[%c0_21, %c0_22, %c0_23, %c0_24], %56 {strides = array<i32>} : memref<1x1x1x256xf32, #tpu.memory_space<vmem>>, vector<1x1x1x256xf32>,
    } else {
    }
    %c0 = arith.constant 0 : index
    %c0_1 = arith.constant 0 : index
    %c0_2 = arith.constant 0 : index
    %3 = vector.load %arg3[%c0, %c0_1, %c0_2] : memref<1x6x256xf32, #tpu.memory_space<vmem>>, vector<1x6x256xf32>
    %4 = vector.shape_cast %3 : vector<1x6x256xf32> to vector<6x256xf32>
    %c0_3 = arith.constant 0 : index
    %c0_4 = arith.constant 0 : index
    %c0_5 = arith.constant 0 : index
    %5 = vector.load %arg4[%c0_3, %c0_4, %c0_5] : memref<1x4x256xf32, #tpu.memory_space<vmem>>, vector<1x4x256xf32>
    %6 = vector.shape_cast %5 : vector<1x4x256xf32> to vector<4x256xf32>
    %cst = arith.constant dense<0xFF800000> : vector<256xf32>
    %7 = vector.multi_reduction <maximumf>, %4, %cst [0] : vector<6x256xf32> to vector<256xf32>
    %8 = vector.shape_cast %7 : vector<256xf32> to vector<1x256xf32>
    %9 = vector.broadcast %8 : vector<1x256xf32> to vector<6x256xf32>
    %10 = arith.subf %4, %9 : vector<6x256xf32>
    %11 = math.exp %10 : vector<6x256xf32>
    %cst_6 = arith.constant dense<0.000000e+00> : vector<256xf32>
    %12 = vector.multi_reduction <add>, %11, %cst_6 [0] : vector<6x256xf32> to vector<256xf32>
    %13 = vector.shape_cast %12 : vector<256xf32> to vector<1x256xf32>
    %14 = vector.extract_strided_slice %11 {offsets = [0, 0], sizes = [4, 256], strides = [1, 1]} : vector<6x256xf32> to vector<4x256xf32>
    %cst_7 = arith.constant dense<0.000000e+00> : vector<256xf32>
    %15 = vector.multi_reduction <add>, %14, %cst_7 [0] : vector<4x256xf32> to vector<256xf32>
    %16 = vector.shape_cast %15 : vector<256xf32> to vector<1x256xf32>
    %17 = arith.subf %13, %16 : vector<1x256xf32>
    %cst_8 = arith.constant 0.000000e+00 : f32
    %18 = vector.broadcast %cst_8 : f32 to vector<1x256xf32>
    %19 = arith.maximumf %17, %18 : vector<1x256xf32>
    %20 = vector.extract_strided_slice %11 {offsets = [0, 0], sizes = [1, 256], strides = [1, 1]} : vector<6x256xf32> to vector<1x256xf32>
    %21 = arith.addf %19, %20 : vector<1x256xf32>
    %22 = math.log %13 : vector<1x256xf32>
    %23 = arith.addf %8, %22 : vector<1x256xf32>
    %24 = math.log %21 : vector<1x256xf32>
    %25 = arith.subf %24, %22 : vector<1x256xf32>
    %cst_9 = arith.constant dense<0xFF800000> : vector<256xf32>
    %26 = vector.multi_reduction <maximumf>, %6, %cst_9 [0] : vector<4x256xf32> to vector<256xf32>
    %27 = vector.shape_cast %26 : vector<256xf32> to vector<1x256xf32>
    %28 = vector.broadcast %27 : vector<1x256xf32> to vector<4x256xf32>
    %29 = arith.subf %6, %28 : vector<4x256xf32>
    %30 = math.exp %29 : vector<4x256xf32>
    %cst_10 = arith.constant dense<0.000000e+00> : vector<256xf32>
    %31 = vector.multi_reduction <add>, %30, %cst_10 [0] : vector<4x256xf32> to vector<256xf32>
    %32 = vector.shape_cast %31 : vector<256xf32> to vector<1x256xf32>
    %33 = tpu.reciprocal %32 {approx = true} : vector<1x256xf32> -> vector<1x256xf32>
    %34 = vector.extract_strided_slice %4 {offsets = [0, 0], sizes = [4, 256], strides = [1, 1]} : vector<6x256xf32> to vector<4x256xf32>
    %35 = vector.broadcast %23 : vector<1x256xf32> to vector<4x256xf32>
    %36 = arith.subf %34, %35 : vector<4x256xf32>
    %37 = arith.mulf %30, %36 : vector<4x256xf32>
    %cst_11 = arith.constant dense<0.000000e+00> : vector<256xf32>
    %38 = vector.multi_reduction <add>, %37, %cst_11 [0] : vector<4x256xf32> to vector<256xf32>
    %39 = vector.shape_cast %38 : vector<256xf32> to vector<1x256xf32>
    %40 = vector.extract_strided_slice %30 {offsets = [0, 0], sizes = [1, 256], strides = [1, 1]} : vector<4x256xf32> to vector<1x256xf32>
    %41 = vector.extract_strided_slice %4 {offsets = [0, 0], sizes = [1, 256], strides = [1, 1]} : vector<6x256xf32> to vector<1x256xf32>
    %42 = arith.subf %41, %23 : vector<1x256xf32>
    %43 = arith.subf %25, %42 : vector<1x256xf32>
    %44 = arith.mulf %40, %43 : vector<1x256xf32>
    %45 = arith.addf %39, %44 : vector<1x256xf32>
    %46 = arith.mulf %45, %33 : vector<1x256xf32>
    %c0_12 = arith.constant 0 : index
    %c0_13 = arith.constant 0 : index
    %c0_14 = arith.constant 0 : index
    %c0_15 = arith.constant 0 : index
    %47 = vector.load %arg5[%c0_12, %c0_13, %c0_14, %c0_15] : memref<1x1x1x256xf32, #tpu.memory_space<vmem>>, vector<1x1x1x256xf32>
    %48 = vector.shape_cast %47 : vector<1x1x1x256xf32> to vector<1x256xf32>
    %49 = arith.addf %48, %46 : vector<1x256xf32>
    %c0_16 = arith.constant 0 : index
    %c0_17 = arith.constant 0 : index
    %c0_18 = arith.constant 0 : index
    %c0_19 = arith.constant 0 : index
    %50 = vector.load %arg5[%c0_16, %c0_17, %c0_18, %c0_19] : memref<1x1x1x256xf32, #tpu.memory_space<vmem>>, vector<1x1x1x256xf32>
    %51 = vector.shape_cast %50 : vector<1x1x1x256xf32> to vector<1x256xf32>
    %52 = vector.shape_cast %49 : vector<1x256xf32> to vector<1x1x1x256xf32>
    tpu.vector_store %arg5[%c0_16, %c0_17, %c0_18, %c0_19], %52 {strides = array<i32>} : memref<1x1x1x256xf32, #tpu.memory_space<vmem>>, vector<1x1x1x256xf32>,
    return
  }
  func.func @transform_0(%arg0: i32, %arg1: i32, %arg2: i32) -> (i32, i32, i32) {
    %c1_i32 = arith.constant 1 : i32
    %0 = arith.muli %arg1, %c1_i32 : i32
    %1 = arith.addi %0, %arg2 : i32
    %c0_i32 = arith.constant 0 : i32
    %c0_i32_0 = arith.constant 0 : i32
    return %arg0, %c0_i32, %1 : i32, i32, i32
  }
  func.func @transform_1(%arg0: i32, %arg1: i32, %arg2: i32) -> (i32, i32, i32) {
    %c1_i32 = arith.constant 1 : i32
    %0 = arith.muli %arg1, %c1_i32 : i32
    %1 = arith.addi %0, %arg2 : i32
    %c0_i32 = arith.constant 0 : i32
    %c0_i32_0 = arith.constant 0 : i32
    return %arg0, %c0_i32, %1 : i32, i32, i32
  }
  func.func @transform_2(%arg0: i32, %arg1: i32, %arg2: i32) -> (i32, i32, i32, i32) {
    %c0_i32 = arith.constant 0 : i32
    %c0_i32_0 = arith.constant 0 : i32
    %c0_i32_1 = arith.constant 0 : i32
    return %arg0, %arg1, %c0_i32, %c0_i32_0 : i32, i32, i32, i32
  }
}

</mosaic_0001>

<bundles_post_ra>
// kernel: tpu_custom_call.1
= control target key start
LH: loop header
LB: loop body
LE: loop exit
PB: predicated region body
PF: predicated region fallthrough
CT: control target
= control target key end

     0   :  { %7 = vsyncpa [#allocation3], 0  ;;  %s901_s0 = inlined_call_operand.vmem [shape: f32[2,6,256], index: 0, kind: input, shape index: {}]   ;;  %s902_s1 = inlined_call_operand.vmem [shape: f32[2,4,256], index: 1, kind: input, shape index: {}]   ;;  %s903_s2 = inlined_call_operand.hbm [shape: f32[2,1,1,256], index: 2, kind: output, shape index: {}]  }
   0x1   :  { %9 = vsyncpa [#allocation3 + $0x1], 0  ;;  %s729_s9 = smov 0   ;;  %s731_s10 = smov 0  }
   0x2   :  { %s733_s11 = smov 0   ;;  %s735_s12 = smov 0  }
   0x3   :  { %s737_s13 = smov 0   ;;  %s739_s14 = smov 0  }
   0x4 LB: > { %s537_s15 = sadd.s32 4294967295, %s709_s14   ;;  %s538_s16 = sadd.s32 4294967294, %s709_s14   ;;  %s709_s14 = sphi %s739_s14, %s15_s14   ;;  %s705_s13 = sphi %s737_s13, %s912_s13   ;;  %s701_s12 = sphi %s735_s12, %s911_s12   ;;  %s697_s11 = sphi %s733_s11, %s910_s11   ;;  %s693_s10 = sphi %s731_s10, %s909_s10   ;;  %s689_s9 = sphi %s729_s9, %s908_s9  }
   0x5   : > { %s34_s17 = sadd.s32 1, %s705_s13  ;;  %s103_s18 = sadd.s32 1, %s697_s11 }
   0x6   : > { %p36_p0 = scmp.ge.s32.totalorder %s34_s17, 2  ;;  %p113_p1 = scmp.ne.s32.totalorder %s697_s11, %s693_s10 }
   0x7   : > { %p114_p2 = scmp.eq.s32.totalorder %s537_s15, 1  ;;  %p119_p3 = scmp.ne.s32.totalorder %s693_s10, %s689_s9 }
   0x8   : > { %s914_s17 = smov (%p36_p0, %s34_s17), 0  ;;  %p120_p5 = scmp.eq.s32.totalorder %s538_s16, 1 }
   0x9   : > { %p769_p4 = por %p114_p2, %p113_p1  ;;  %s98_s20 = ssub.s32 %s705_s13, %s914_s17 }
   0xa   : > { %p541_p6 = scmp.ge.s32.totalorder %s709_s14, 1  ;;  %p101_p7 = scmp.eq.s32.totalorder %s98_s20, 0 }
   0xb   : > { %p776_p8 = por %p120_p5, %p119_p3  ;;  %p168_p9 = scmp.lt.s32.totalorder %s709_s14, 3 }
   0xc   : > { %s782_s22 = scalar_select %p101_p7, %s697_s11, %s103_s18  }
   0xd   : > { %p169_p10 = pnand %p541_p6, %p168_p9 }
   0xe   : > { %s202_s23 = sand.u32 (!%p169_p10), 1, %s693_s10   ;;  %p207_p11 = scmp.lt.s32.totalorder (!%p169_p10), %s701_s12, 1  ;;  %v233_v0 = vlaneseq (!%p169_p10)  ;;  %v711_v2 = vmov (!%p169_p10), 0.0   ;;  %vm241_vm1 = vcmask (!%p169_p10), 1045504   ;;  %vm276_vm2 = vcmask (!%p169_p10), 1043456  }
   0xf   : > { %172 = sbr.rel (%p169_p10) target bundleno = 131 (0x83), region = 28  ;;  %s542_s24 = sshll.u32 (!%p169_p10), %s202_s23, 1 }
  0x10   : > { %vm789_vm0 = vcmp.lt.s32.totalorder (!%p169_p10), %v233_v0, 256  ;;  %s794_s26 = scalar_lea.vmem (!%p169_p10), [#allocation2], %s542_s24  ;;  %s554_s7 = sshll.u32 (!%p169_p10), %s701_s12, 5 }
  0x11   : > { %237 = vst.msk [vmem:[%s794_s26] sm:$0x3] (!%p169_p10), %vm789_vm0, %v711_v2  ;;  %s440_s8 = sshll.u32 (!%p169_p10), %s794_s26, 4  ;;  %s849_s18 = scalar_lea.hbm (!%p169_p10), %s903_s2, %s554_s7  ;;  %s851_s8 = int_to_ptr.vmem [resolvable:$true] %s440_s8 }
  0x12   : > { %s424_s20 = scalar_lea.sflag (!%p169_p10), [#allocation3], %s202_s23  ;;  %s631_s24 = scalar_lea.vmem (!%p169_p10), %s851_s8, 32 }
  0x13   : > { %p632_p12 = scmp.ne.s32.totalorder (!%p169_p10), %s851_s8, %s631_s24 }
  0x15   : > { %p633_p13 = pnand (!%p169_p10), %p632_p12, %p769_p4 }
  0x16   : > { %s208_s25 = scalar_select %p207_p11, %s701_s12, 1 }
  0x17   : > { %p634_p0 = pneg %p633_p13  ;;  %s713_s12 = smov [#allocation2]  }
  0x18   : > { %s552_s27 = sshll.u32 %s208_s25, 4  ;;  %s553_s28 = sshll.u32 %s208_s25, 3 }
  0x19   : > { %s214_s3 = scalar_lea.vmem %s901_s0, %s552_s27  ;;  %s226_s6 = scalar_lea.vmem %s902_s1, %s553_s28 }
  0x1a   : > { %v805_v3 = vld [vmem:[%s214_s3] sm:$0x3f]  ;;  %v807_v4 = vld [vmem:[%s214_s3 + $0x8] sm:$0x3f]  ;;  %s635_s25 = sshll.u32 %s713_s12, 4  ;;  %s636_s25 = int_to_ptr.vmem [resolvable:$false] %s635_s25 }
  0x1b   : > { %v240_v5 = vld [vmem:[%s226_s6] sm:$0xff]  ;;  %v242_v6 = vsel %vm241_vm1, %v805_v3, -inf  ;;  %v249_v7 = vsel %vm241_vm1, %v807_v4, -inf  ;;  %s637_s27 = scalar_lea.vmem %s636_s25, 64  ;;  %p638_p1 = scmp.lt.s32.totalorder %s851_s8, %s636_s25 }
  0x1c   : > { %v310_v8 = vcombine.high %v240_v5, %v240_v5  ;;  %v312_v9 = vsel %vm276_vm2, %v240_v5, -inf  ;;  %v243_v10 = vrot.slane %v242_v6, 4  ;;  %v250_v11 = vrot.slane %v249_v7, 4  ;;  %p639_p2 = scmp.lt.s32.totalorder %s637_s27, %s631_s24 }
  0x1d   : > { %v313_v12 = vrot.slane %v312_v9, 4 }
  0x1e   : > { %v319_v13 = vsel %vm276_vm2, %v310_v8, -inf  ;;  %v244_v14 = vmax.f32 %v242_v6, %v243_v10  ;;  %v251_v15 = vmax.f32 %v249_v7, %v250_v11  ;;  %p640_p3 = por %p639_p2, %p638_p1 }
  0x1f   : > { %v314_v16 = vmax.f32 %v312_v9, %v313_v12  ;;  %v320_v17 = vrot.slane %v319_v13, 4 }
  0x20   : > { %v245_v18 = vrot.slane %v244_v14, 2  ;;  %v252_v19 = vrot.slane %v251_v15, 2  ;;  %p641_p5 = pnand %p640_p3, %p634_p0 }
  0x21   : > { %v315_v20 = vrot.slane %v314_v16, 2  ;;  %v321_v21 = vmax.f32 %v319_v13, %v320_v17 }
  0x22   : > { %v246_v22 = vmax.f32 %v244_v14, %v245_v18  ;;  %v253_v23 = vmax.f32 %v251_v15, %v252_v19 }
  0x23   : > { %v316_v24 = vmax.f32 %v314_v16, %v315_v20  ;;  %v322_v25 = vrot.slane %v321_v21, 2 }
  0x24   : > { %v247_v26 = vrot.slane %v246_v22, 1  ;;  %v254_v27 = vrot.slane %v253_v23, 1 }
  0x25   : > { %v317_v28 = vrot.slane %v316_v24, 1  ;;  %v323_v29 = vmax.f32 %v321_v21, %v322_v25 }
  0x26   : > { %v815_v30 = vmax.f32 %v246_v22, %v247_v26  ;;  %v817_v31 = vmax.f32 %v253_v23, %v254_v27 }
  0x27   : > { %v318_v32 = vmax.f32 %v316_v24, %v317_v28  ;;  %v324_v33 = vrot.slane %v323_v29, 1 }
  0x28   : > { %v256_v34 = vsub.f32 %v805_v3, %v815_v30  ;;  %v257_v35 = vsub.f32 %v807_v4, %v817_v31 }
  0x29   : > { %v325_v36 = vmax.f32 %v323_v29, %v324_v33 }
  0x2a   : > { %v258_v37 = vmul.f32 1.442695, %v256_v34  ;;  %v260_v38 = vmul.f32 1.442695, %v257_v35 }
  0x2b   : > { %v328_v39 = vcombine.low %v318_v32, %v325_v36 }
  0x2c   : > { %613 = vpow2.f32 %v258_v37 }
  0x2d   : > { %v330_v40 = vsub.f32 %v240_v5, %v328_v39  ;;  %615 = vpow2.f32 %v260_v38 }
  0x2f   : > { %v331_v41 = vmul.f32 1.442695, %v330_v40 }
  0x31   : > { %617 = vpow2.f32 %v331_v41 }
  0x36   : > { %v614_v42 = vpop.eup %613 }
  0x37   : > { %v616_v43 = vpop.eup %615  ;;  %v262_v44 = vsel %vm241_vm1, %v614_v42, 0.0  ;;  %v277_v45 = vsel %vm276_vm2, %v614_v42, 0.0 }
  0x38   : > { %v263_v46 = vrot.slane %v262_v44, 4  ;;  %v269_v47 = vsel %vm241_vm1, %v616_v43, 0.0  ;;  %v278_v48 = vrot.slane %v277_v45, 4  ;;  %v284_v49 = vsel %vm276_vm2, %v616_v43, 0.0 }
  0x39   : > { %v270_v50 = vrot.slane %v269_v47, 4  ;;  %v285_v51 = vrot.slane %v284_v49, 4 }
  0x3a   : > { %v264_v52 = vadd.f32 %v263_v46, %v262_v44  ;;  %v279_v53 = vadd.f32 %v278_v48, %v277_v45 }
  0x3b   : > { %v271_v54 = vadd.f32 %v270_v50, %v269_v47  ;;  %v286_v55 = vadd.f32 %v285_v51, %v284_v49  ;;  %v827_v56 = vpop.eup %617 }
  0x3c   : > { %v265_v57 = vrot.slane %v264_v52, 2  ;;  %v280_v58 = vrot.slane %v279_v53, 2  ;;  %v334_v5 = vcombine.high %v827_v56, %v827_v56  ;;  %v336_v10 = vsel %vm276_vm2, %v827_v56, 0.0 }
  0x3d   : > { %v272_v59 = vrot.slane %v271_v54, 2  ;;  %v287_v60 = vrot.slane %v286_v55, 2  ;;  %v337_v17 = vrot.slane %v336_v10, 4 }
  0x3e   : > { %v266_v61 = vadd.f32 %v265_v57, %v264_v52  ;;  %v281_v62 = vadd.f32 %v280_v58, %v279_v53  ;;  %v343_v15 = vsel %vm276_vm2, %v334_v5, 0.0 }
  0x3f   : > { %v273_v63 = vadd.f32 %v272_v59, %v271_v54  ;;  %v288_v2 = vadd.f32 %v287_v60, %v286_v55  ;;  %v344_v20 = vrot.slane %v343_v15, 4  ;;  %v338_v23 = vadd.f32 %v337_v17, %v336_v10 }
  0x40   : > { %v267_v6 = vrot.slane %v266_v61, 1  ;;  %v282_v7 = vrot.slane %v281_v62, 1 }
  0x41   : > { %v274_v8 = vrot.slane %v273_v63, 1  ;;  %v289_v9 = vrot.slane %v288_v2, 1  ;;  %v345_v25 = vadd.f32 %v344_v20, %v343_v15  ;;  %v339_v26 = vrot.slane %v338_v23, 2 }
  0x42   : > { %v268_v11 = vadd.f32 %v267_v6, %v266_v61  ;;  %v283_v12 = vadd.f32 %v282_v7, %v281_v62 }
  0x43   : > { %v275_v13 = vadd.f32 %v274_v8, %v273_v63  ;;  %v290_v14 = vadd.f32 %v289_v9, %v288_v2  ;;  %v346_v28 = vrot.slane %v345_v25, 2  ;;  %v340_v34 = vadd.f32 %v339_v26, %v338_v23  ;;  %v398_v23 = vld [vmem:[%s794_s26] sm:$0x3] }
  0x44   : > { %v291_v16 = vsub.f32 %v268_v11, %v283_v12  ;;  %619 = vlog2.f32 %v268_v11  ;;  %v712_v9 = vmov 1966171168  }
  0x45   : > { %v292_v18 = vsub.f32 %v275_v13, %v290_v14  ;;  %621 = vlog2.f32 %v275_v13  ;;  %v347_v37 = vadd.f32 %v346_v28, %v345_v25  ;;  %v341_v41 = vrot.slane %v340_v34, 1 }
  0x46   : > { %v293_v19 = vmax.f32 %v291_v16, 0.0 }
  0x47   : > { %v294_v21 = vmax.f32 %v292_v18, 0.0  ;;  %v348_v46 = vrot.slane %v347_v37, 1  ;;  %v342_v50 = vadd.f32 %v341_v41, %v340_v34 }
  0x48   : > { %v295_v22 = vadd.f32 %v614_v42, %v293_v19 }
  0x49   : > { %v296_v24 = vadd.f32 %v616_v43, %v294_v21 }
  0x4a   : > { %623 = vlog2.f32 %v295_v22 }
  0x4b   : > { %625 = vlog2.f32 %v296_v24 }
  0x4c   : > { %627 = vrcp.f32 %v342_v50 }
  0x4e   : > { %v620_v27 = vpop.eup %619 }
  0x4f   : > { %v622_v29 = vpop.eup %621  ;;  %v298_v32 = vmul.f32 0.6931472, %v620_v27 }
  0x50   : > { %v300_v33 = vmul.f32 0.6931472, %v622_v29 }
  0x51   : > { %v301_v35 = vadd.f32 %v298_v32, %v815_v30 }
  0x52   : > { %v302_v36 = vadd.f32 %v300_v33, %v817_v31 }
  0x53   : > { %v352_v38 = vsub.f32 %v805_v3, %v301_v35  ;;  %v349_v3 = vadd.f32 %v348_v46, %v347_v37 }
  0x54   : > { %v624_v39 = vpop.eup %623  ;;  %v353_v40 = vsub.f32 %v807_v4, %v302_v36  ;;  %v385_v4 = vshrl.u32 %v233_v0, 7  ;;  %v403_v0 = vunpack.c.l.s4 %v712_v9 }
  0x55   : > { %v626_v42 = vpop.eup %625  ;;  %v304_v43 = vmul.f32 0.6931472, %v624_v39  ;;  %629 = vrcp.f32 %v349_v3 }
  0x56   : > { %v306_v44 = vmul.f32 0.6931472, %v626_v42  ;;  %v356_v45 = vcombine.low %v352_v38, %v353_v40  ;;  %v386_v62 = vsub.s32 0, %v385_v4  ;;  %v390_v5 = vsub.s32 4, %v385_v4  ;;  %v628_v13 = vpop.eup %627 }
  0x57   : > { %v307_v47 = vsub.f32 %v304_v43, %v298_v32 }
  0x58   : > { %v308_v48 = vsub.f32 %v306_v44, %v300_v33  ;;  %v358_v49 = vmul.f32 %v827_v56, %v356_v45 }
  0x59   : > { %v376_v30 = vsub.f32 %v307_v47, %v352_v38 }
  0x5a   : > { %v360_v51 = vcombine.high %v358_v49, %v358_v49  ;;  %v362_v31 = vsel %vm276_vm2, %v358_v49, 0.0  ;;  %v377_v52 = vsub.f32 %v308_v48, %v353_v40 }
  0x5b   : > { %v363_v53 = vrot.slane %v362_v31, 4 }
  0x5c   : > { %v369_v54 = vsel %vm276_vm2, %v360_v51, 0.0  ;;  %v380_v55 = vcombine.low %v376_v30, %v377_v52 }
  0x5d   : > { %v364_v57 = vadd.f32 %v363_v53, %v362_v31  ;;  %v370_v58 = vrot.slane %v369_v54, 4 }
  0x5e   : > { %v382_v61 = vmul.f32 %v827_v56, %v380_v55  ;;  %v404_v56 = vunpack.c.0.s8 %v403_v0 }
  0x5f   : > { %v365_v59 = vrot.slane %v364_v57, 2  ;;  %v371_v60 = vadd.f32 %v370_v58, %v369_v54  ;;  %v630_v16 = vpop.eup %629 }
  0x60   : > { %v387_v8 = vrot.slane %v382_v61, %v386_v62  ;;  %v391_v12 = vrot.slane %v382_v61, %v390_v5  ;;  %v407_v19 = vsub.s32 %v404_v56, %v385_v4 }
  0x61   : > { %v366_v63 = vadd.f32 %v365_v59, %v364_v57  ;;  %v372_v2 = vrot.slane %v371_v60, 2 }
  0x63   : > { %v367_v6 = vrot.slane %v366_v63, 1  ;;  %v373_v7 = vadd.f32 %v372_v2, %v371_v60 }
  0x65   : > { %v368_v10 = vadd.f32 %v367_v6, %v366_v63  ;;  %v374_v11 = vrot.slane %v373_v7, 1 }
  0x67   : > { %v375_v14 = vadd.f32 %v374_v11, %v373_v7  ;;  %v394_v15 = vadd.f32 %v387_v8, %v368_v10 }
  0x69   : > { %v395_v17 = vadd.f32 %v391_v12, %v375_v14  ;;  %v396_v18 = vmul.f32 %v628_v13, %v394_v15 }
  0x6b   : > { %v397_v20 = vmul.f32 %v630_v16, %v395_v17 }
  0x6d   : > { %v401_v21 = vcombine.low %v396_v18, %v397_v20 }
  0x6f   : > { %v408_v22 = vrot.slane %v401_v21, %v407_v19 }
  0x71   : > { %v415_v24 = vrot.slane %v408_v22, %v407_v19 }
  0x73   : > { %v417_v25 = vadd.f32 %v415_v24, %v398_v23 }
  0x75   : > { %422 = vst.msk [vmem:[%s794_s26] sm:$0x3] %vm789_vm0, %v417_v25 }
  0x76   : > { %644 = shalt.err (!%p641_p5)
}
  0x77   : > { %s645_s23 = scalar_lea.hbm %s849_s18, 32  ;;  %s649_s29 = scalar_lea.hbm %s903_s2, 64 }
  0x78   : > { %p646_p6 = scmp.ne.s32.totalorder %s849_s18, %s645_s23  ;;  %p650_p10 = scmp.lt.u32.totalorder %s849_s18, %s903_s2 }
  0x79   : > { %p651_p11 = scmp.lt.u32.totalorder %s649_s29, %s645_s23  ;;  %p653_p13 = scmp.lt.u32.totalorder %s645_s23, %s849_s18 }
  0x7a   : > { %p647_p7 = pnand %p646_p6, %p769_p4 }
  0x7b   : > { %p652_p12 = por %p651_p11, %p650_p10 }
  0x7c   : > { %p648_p9 = pneg %p647_p7 }
  0x7d   : > { %p654_p0 = por %p653_p13, %p652_p12 }
  0x7f   : > { %p655_p1 = pnand %p654_p0, %p648_p9 }
  0x81   : > { %658 = shalt.err (!%p655_p1)
}
  0x82   : > { %555 = dma.vmem_to_hbm [thread:$0]  (%p769_p4), %s851_s8, 32, %s849_s18, %s424_s20  }
  0x83 PF: > { %p561_p2 = scmp.ge.s32.totalorder %s709_s14, 2  ;;  %s452_s4 = sand.u32 1, %s689_s9  }
  0x84   : > { %s453_s5 = scalar_lea.sflag [#allocation3], %s452_s4 }
  0x85   : > { %p558_p3 = pnand %p561_p2, %p776_p8 }
  0x87   : > { %684 = dma.done.wait (!%p558_p3), %s453_s5, 32  }
  0x88   : > { %686 = vsyncadd (!%p558_p3), %s453_s5, 4294967264  ;;  %s15_s14 = sadd.s32 1, %s709_s14   ;;  %s908_s9 = smov %s693_s10 }
  0x89   : > { %p12_p5 = scmp.ge.s32.totalorder %s15_s14, 4   ;;  %s909_s10 = smov %s697_s11 }
  0x8a   : > { %s910_s11 = smov %s782_s22  ;;  %s911_s12 = smov %s705_s13 }
  0x8b   : > { %s912_s13 = smov %s914_s17  ;;  %14 = sbr.rel (!%p12_p5) target bundleno = 4 (0x4), region = 70 }
  0x92   :  { %458 = vsyncpa [#allocation3], 1 }
  0x93   :  { %460 = vsyncpa [#allocation3 + $0x1], 1 }

</bundles_post_ra>
